<compile_context>
chip_gen: v6e
topology: v6e:2x2x1
jax: 0.10.0
libtpu: 0.0.40
codegen_flags: <defaults>
</compile_context>

<pallas_src>
import functools

import jax
import jax.numpy as jnp
from jax.experimental import pallas as pl
from jax.experimental.pallas import tpu as pltpu

_LANE = 128
_SUBLANE = 8


def _vmem_budget():
    """Returns (working budget, scoped vmem limit) in bytes, generation-aware."""
    phys = 0
    try:
        phys = int(pltpu.get_tpu_info().vmem_capacity_bytes)
    except Exception:
        phys = 0
    if phys >= 100 * 1024 * 1024:       # v5e / v6e: 128 MiB physical VMEM
        limit = 96 * 1024 * 1024
    else:                               # v7x (64 MiB per TensorCore) or unknown
        limit = 48 * 1024 * 1024
    return (limit * 4) // 5, limit      # keep ~20% headroom for compiler scratch


def _pick_tile_cout(c_in, c_out, itemsize_w, max_w_bytes):
    """Largest output-channel tile whose weight slab (x2 for double buffering) fits."""
    per_col = 2 * c_in * itemsize_w
    if c_out * per_col <= max_w_bytes:
        return c_out                    # whole dense weight stays resident (fast path)
    # TODO(synk): for very large C a grouped (G, ipg, opg) weight (ipg/opg padded to the
    # MXU tile: 128 on v5e, 256 on v6e/v7x) avoids the G-fold zero MACs and the dense
    # slab entirely; column tiling below is the simple VMEM-safe fallback.
    t = max(_LANE, (max_w_bytes // per_col) // _LANE * _LANE)
    return c_out if t >= c_out else t


def _entrywise_kernel(*refs, residual: bool, col_tiled: bool):
    if residual and col_tiled:
        x_ref, xr_ref, w_ref, o_ref = refs
    else:
        x_ref, w_ref, o_ref = refs
        xr_ref = None
    x = x_ref[...]
    # (tile_n, c_in) @ (c_in, tile_cout) on the MXU with f32 accumulation.
    y = jnp.dot(x, w_ref[...], preferred_element_type=jnp.float32)
    if residual:
        xr = xr_ref[...] if col_tiled else x
        y = y + xr.astype(jnp.float32)
    o_ref[...] = y.astype(o_ref.dtype)


def entrywise_x(x, w_dense, *, residual, tile_n=2048, tile_cout=None):
    """x: (N, C_in); w_dense: (C_in, C_out) block-diagonal dense weight."""
    n, c_in = x.shape
    c_in_w, c_out = w_dense.shape
    assert c_in == c_in_w
    if residual:
        assert c_in == c_out, "residual requires in_features == out_features"

    itemsize_x = jnp.dtype(x.dtype).itemsize
    itemsize_w = jnp.dtype(w_dense.dtype).itemsize
    budget, vmem_limit = _vmem_budget()

    # --- output-channel tiling (weight fully resident whenever it fits) ---
    if tile_cout is None:
        tile_cout = _pick_tile_cout(c_in, c_out, itemsize_w, budget // 2)
    assert tile_cout == c_out or tile_cout % _LANE == 0, \
        "tile_cout must be c_out or a multiple of 128"
    num_col = pl.cdiv(c_out, tile_cout)
    col_tiled = num_col > 1

    # --- row tiling: dtype-aware sublane alignment, budgeted against remaining VMEM ---
    row_align = max(_SUBLANE, 32 // itemsize_x)                 # 8 f32 / 16 bf16 / 32 int8
    w_bytes = 2 * c_in * tile_cout * itemsize_w                 # resident weight, x2 dbl-buf
    per_row = c_in + tile_cout                                  # x row + out row
    if residual and col_tiled:
        per_row += tile_cout                                    # extra column-tiled x view
    row_bytes = 2 * per_row * itemsize_x                        # double-buffered tiles
    max_rows = max(row_align, max(0, budget - w_bytes) // row_bytes)
    tile_n = min(tile_n, max_rows)
    if tile_n >= n:
        tile_n = n                                              # full-extent block: always legal
    else:
        tile_n = max(row_align, (tile_n // row_align) * row_align)
    num_row = pl.cdiv(n, tile_n)

    in_specs = [pl.BlockSpec((tile_n, c_in), lambda i, j: (i, 0))]
    operands = [x]
    if residual and col_tiled:
        # Column-tiled view of x for the residual add (partial trailing block is safe:
        # its garbage lanes only feed output columns whose stores are discarded).
        in_specs.append(pl.BlockSpec((tile_n, tile_cout), lambda i, j: (i, j)))
        operands.append(x)
    # Constant row index -> weight block stays resident across the row grid.
    in_specs.append(pl.BlockSpec((c_in, tile_cout), lambda i, j: (0, j)))
    operands.append(w_dense)

    kernel = functools.partial(_entrywise_kernel, residual=residual, col_tiled=col_tiled)

    return pl.pallas_call(
        kernel,
        out_shape=jax.ShapeDtypeStruct((n, c_out), x.dtype),
        grid_spec=pltpu.PrefetchScalarGridSpec(
            num_scalar_prefetch=0,
            grid=(num_row, num_col),
            in_specs=in_specs,
            out_specs=pl.BlockSpec((tile_n, tile_cout), lambda i, j: (i, j)),
        ),
        compiler_params=pltpu.CompilerParams(
            dimension_semantics=("parallel", "arbitrary"),   # rows shard over both TCs
            vmem_limit_bytes=vmem_limit,
        ),
    )(*operands)


def make_dense_weight(conv_weight, n_groups):
    """conv_weight: (out_features, in_features // n_groups, 1) -> dense (in_f, out_f)."""
    out_f, ipg, _ = conv_weight.shape
    opg = out_f // n_groups
    w = conv_weight[..., 0]                                            # (out_f, ipg)
    blocks = [w[g * opg:(g + 1) * opg, :].T for g in range(n_groups)]  # each (ipg, opg)
    return jax.scipy.linalg.block_diag(*blocks).astype(conv_weight.dtype)


def entrywise_x_ref(x, w_dense, *, residual):
    y = x @ w_dense
    return y + x if residual else y


if __name__ == "__main__":
    key = jax.random.PRNGKey(0)
    k1, k2, k3, k4, k5, k6, k7 = jax.random.split(key, 7)

    # --- 1) residual=True, in == out, module-style tiny shapes ---
    N, C, G = 8, 32, 8
    x = jax.random.normal(k1, (N, C), dtype=jnp.float32)
    cw = jax.random.normal(k2, (C, C // G, 1), dtype=jnp.float32) * 0.1
    w = make_dense_weight(cw, G)
    out = jax.block_until_ready(entrywise_x(x, w, residual=True))
    ref = entrywise_x_ref(x, w, residual=True)
    assert out.shape == ref.shape
    assert jnp.allclose(out, ref, atol=1e-5, rtol=1e-5)

    # --- 2) residual=False, out_features != in_features ---
    C_OUT = 64
    cw2 = jax.random.normal(k3, (C_OUT, C // G, 1), dtype=jnp.float32) * 0.1
    w2 = make_dense_weight(cw2, G)
    out2 = jax.block_until_ready(entrywise_x(x, w2, residual=False))
    ref2 = entrywise_x_ref(x, w2, residual=False)
    assert out2.shape == ref2.shape
    assert jnp.allclose(out2, ref2, atol=1e-5, rtol=1e-5)

    # --- 3) multiple row tiles + trailing partial block (no-row-padding path) ---
    N3, C3, G3 = 300, 128, 16
    x3 = jax.random.normal(k4, (N3, C3), dtype=jnp.float32)
    cw3 = jax.random.normal(k5, (C3, C3 // G3, 1), dtype=jnp.float32) * 0.1
    w3 = make_dense_weight(cw3, G3)
    out3 = jax.block_until_ready(entrywise_x(x3, w3, residual=True, tile_n=128))
    ref3 = entrywise_x_ref(x3, w3, residual=True)
    assert out3.shape == ref3.shape
    assert jnp.allclose(out3, ref3, atol=1e-4, rtol=1e-4)

    # --- 4) forced column tiling of the weight (large-weight fallback) with residual ---
    N4, C4, G4 = 16, 256, 32
    x4 = jax.random.normal(k6, (N4, C4), dtype=jnp.float32)
    cw4 = jax.random.normal(k7, (C4, C4 // G4, 1), dtype=jnp.float32) * 0.1
    w4 = make_dense_weight(cw4, G4)
    out4 = jax.block_until_ready(entrywise_x(x4, w4, residual=True, tile_cout=128))
    ref4 = entrywise_x_ref(x4, w4, residual=True)
    assert out4.shape == ref4.shape
    assert jnp.allclose(out4, ref4, atol=1e-4, rtol=1e-4)

    print("KERNEL_OK")
</pallas_src>

<mosaic_0001>
module attributes {stable_mosaic.version = 11 : i64} {
  func.func @_entrywise_kernel(%arg0: i32, %arg1: i32, %arg2: memref<8x32xf32, #tpu.memory_space<vmem>>, %arg3: memref<32x32xf32, #tpu.memory_space<vmem>>, %arg4: memref<8x32xf32, #tpu.memory_space<vmem>>) attributes {dimension_semantics = [#tpu.dimension_semantics<parallel>, #tpu.dimension_semantics<arbitrary>], iteration_bounds = array<i64: 1, 1>, scalar_prefetch = 0 : i64, scratch_operands = 0 : i64, tpu.core_type = #tpu.core_type<tc>, window_params = [{transform_indices = @transform_0, window_bounds = array<i64: 8, 32>}, {transform_indices = @transform_1, window_bounds = array<i64: 32, 32>}, {transform_indices = @transform_2, window_bounds = array<i64: 8, 32>}]} {
    %c0 = arith.constant 0 : index
    %c0_0 = arith.constant 0 : index
    %0 = vector.load %arg2[%c0, %c0_0] : memref<8x32xf32, #tpu.memory_space<vmem>>, vector<8x32xf32>
    %c0_1 = arith.constant 0 : index
    %c0_2 = arith.constant 0 : index
    %1 = vector.load %arg3[%c0_1, %c0_2] : memref<32x32xf32, #tpu.memory_space<vmem>>, vector<32x32xf32>
    %cst = arith.constant dense<0.000000e+00> : vector<8x32xf32>
    %2 = tpu.matmul %0, %1, %cst {dimension_numbers = #tpu.dot_dimension_numbers<[1], [0], [0], [1], [0, 0, 1, 1], [], []>} : vector<8x32xf32>, vector<32x32xf32>, vector<8x32xf32> -> vector<8x32xf32>
    %3 = arith.addf %2, %0 : vector<8x32xf32>
    %c0_3 = arith.constant 0 : index
    %c0_4 = arith.constant 0 : index
    %4 = vector.load %arg4[%c0_3, %c0_4] : memref<8x32xf32, #tpu.memory_space<vmem>>, vector<8x32xf32>
    tpu.vector_store %arg4[%c0_3, %c0_4], %3 {strides = array<i32>} : memref<8x32xf32, #tpu.memory_space<vmem>>, vector<8x32xf32>,
    return
  }
  func.func @transform_0(%arg0: i32, %arg1: i32) -> (i32, i32) {
    %c0_i32 = arith.constant 0 : i32
    %c0_i32_0 = arith.constant 0 : i32
    return %arg0, %c0_i32 : i32, i32
  }
  func.func @transform_1(%arg0: i32, %arg1: i32) -> (i32, i32) {
    %c0_i32 = arith.constant 0 : i32
    %c0_i32_0 = arith.constant 0 : i32
    return %c0_i32, %arg1 : i32, i32
  }
  func.func @transform_2(%arg0: i32, %arg1: i32) -> (i32, i32) {
    %c0_i32 = arith.constant 0 : i32
    return %arg0, %arg1 : i32, i32
  }
}

</mosaic_0001>

<bundles_post_ra>
// kernel: tpu_custom_call.1
= control target key start
LH: loop header
LB: loop body
LE: loop exit
PB: predicated region body
PF: predicated region fallthrough
CT: control target
= control target key end

     0   :  { %7 = vsyncpa [#allocation3], 0  ;;  %s255_s0 = inlined_call_operand.hbm [shape: f32[8,32], index: 0, kind: input, shape index: {}]   ;;  %s256_s1 = inlined_call_operand.hbm [shape: f32[32,32], index: 1, kind: input, shape index: {}]   ;;  %s257_s2 = inlined_call_operand.hbm [shape: f32[8,32], index: 2, kind: output, shape index: {}]  }
   0x1   :  { %8 = vsyncpa [#allocation6], 0 }
   0x2   :  { %9 = vsyncpa [#allocation4], 0  ;;  %s224_s9 = smov [#allocation2]   ;;  %s225_s11 = smov [#allocation5]  }
   0x3   :  { %s16_s10 = sshll.u32 %s224_s9, 4  ;;  %s25_s12 = sshll.u32 %s225_s11, 4  ;;  %s17_s10 = int_to_ptr.vmem [resolvable:$true] %s16_s10  ;;  %s26_s12 = int_to_ptr.vmem [resolvable:$true] %s25_s12 }
   0x4   :  { %s166_s13 = scalar_lea.vmem %s17_s10, 128  ;;  %p171_p1 = scmp.lt.s32.totalorder %s17_s10, %s17_s10 }
   0x5   :  { %p167_p0 = scmp.ne.s32.totalorder %s17_s10, %s166_s13  ;;  %p172_p2 = scmp.lt.s32.totalorder %s166_s13, %s166_s13 }
   0x7   :  { %p173_p3 = por %p172_p2, %p171_p1 }
   0x9   :  { %p174_p4 = pnand %p173_p3, %p167_p0 }
   0xb   :  { %177 = shalt.err (!%p174_p4)
}
   0xc   :  { %19 = dma.hbm_to_vmem [thread:$0]  %s255_s0, 128, %s17_s10, [#allocation3]  }
   0xd   :  { %s186_s16 = scalar_lea.vmem %s26_s12, 512  ;;  %p191_p6 = scmp.lt.s32.totalorder %s26_s12, %s26_s12 }
   0xe   :  { %p187_p5 = scmp.ne.s32.totalorder %s26_s12, %s186_s16  ;;  %p192_p7 = scmp.lt.s32.totalorder %s186_s16, %s186_s16 }
  0x10   :  { %p193_p8 = por %p192_p7, %p191_p6 }
  0x12   :  { %p194_p9 = pnand %p193_p8, %p187_p5 }
  0x14   :  { %197 = shalt.err (!%p194_p9)
}
  0x15   :  { %s226_s17 = smov 128   ;;  %s227_s18 = smov 8  }
  0x16   :  { %31 = dma.hbm_to_vmem [thread:$0]  %s256_s1, 512, %s26_s12, [#allocation6], %s226_s17, %s226_s17, %s227_s18  }
  0x17   :  { %218 = dma.done.wait [#allocation3], 128  }
  0x18   :  { %219 = vsyncadd [#allocation3], 4294967168 }
  0x19   :  { %220 = dma.done.wait [#allocation6], 512  }
  0x1a   :  { %221 = vsyncadd [#allocation6], 4294966784  ;;  %v228_v0 = vmov 0.0   ;;  %vm229_vm0 = vmmov 0   ;;  %v42_v1 = vld [vmem:[#allocation5 + $0x18] sm:$0xff]  ;;  %v41_v2 = vld [vmem:[#allocation5 + $0x10] sm:$0xff] }
  0x1b   :  { %140 = vmatprep.subr.mxu0 %v228_v0  ;;  %148 = vmatprep.mubr.msk.f32.mxu0 %vm229_vm0, %v228_v0  ;;  %v40_v3 = vld [vmem:[#allocation5 + $0x8] sm:$0xff]  ;;  %v39_v4 = vld [vmem:[#allocation5] sm:$0xff]  ;;  %v38_v5 = vld [vmem:[#allocation2] sm:$0xff]  ;;  %vm43_vm1 = vcmask 261120   ;;  %s230_s0 = smov [#allocation7]  }
  0x1c   :  { %141 = vmatpush3.msra.mxu0 %v42_v1  ;;  %s124_s1 = sshll.u32 %s230_s0, 4  ;;  %s125_s1 = int_to_ptr.vmem [resolvable:$true] %s124_s1 }
  0x1d   :  { %142 = vmatprep.subr.mxu0 %v228_v0  ;;  %s198_s21 = scalar_lea.vmem %s125_s1, 128  ;;  %p203_p11 = scmp.lt.s32.totalorder %s125_s1, %s125_s1 }
  0x1e   :  { %143 = vmatpush3.msra.mxu0 %v41_v2  ;;  %p199_p10 = scmp.ne.s32.totalorder %s125_s1, %s198_s21  ;;  %p204_p12 = scmp.lt.s32.totalorder %s198_s21, %s198_s21 }
  0x1f   :  { %144 = vmatprep.subr.mxu0 %v228_v0 }
  0x20   :  { %145 = vmatpush3.msra.mxu0 %v40_v3  ;;  %p205_p13 = por %p204_p12, %p203_p11 }
  0x21   :  { %146 = vmatprep.subr.mxu0 %v228_v0 }
  0x22   :  { %147 = vmatpush3.msra.mxu0 %v39_v4  ;;  %p206_p0 = pnand %p205_p13, %p199_p10 }
  0x23   :  { %149 = vmatmul.mubr.msk.f32.vlgmr.msra.gmra.mxu0 %vm43_vm1, %v38_v5 }
  0xe3   :  { %v113_v6 = vpop.f32.mrf.mxu0 }
  0xe4   :  { %v114_v7 = vadd.f32 %v113_v6, %v38_v5 }
  0xe5   :  { %v150_v8 = vpop.f32.mrf.mxu0 }
  0xe6   :  { %117 = vst.msk [vmem:[#allocation7] sm:$0xff] %vm43_vm1, %v114_v7 }
  0xe7   :  { %209 = shalt.err (!%p206_p0)
}
  0xe8   :  { %127 = dma.vmem_to_hbm [thread:$0]  %s125_s1, 128, %s257_s2, [#allocation4]  }
  0xe9   :  { %222 = dma.done.wait [#allocation4], 128  }
  0xea   :  { %223 = vsyncadd [#allocation4], 4294967168 }
  0xeb   :  { %131 = vsyncpa [#allocation3], 1 }
  0xec   :  { %132 = vsyncpa [#allocation6], 1 }
  0xed   :  { %133 = vsyncpa [#allocation4], 1 }

</bundles_post_ra>
